<compile_context>
chip_gen: v6e
topology: v6e:2x2x1
jax: 0.10.0
libtpu: 0.0.40
codegen_flags: <defaults>
</compile_context>

<pallas_src>
import jax
import jax.numpy as jnp
from jax.experimental import pallas as pl
from jax.experimental.pallas import tpu as pltpu


def _round_up(x, m):
    return (x + m - 1) // m * m


def _choose_batch_tile(batch, block_b):
    """Batch tile: multiple of 8 sublanes; prefer >=2 tiles (v7x dual-TC)."""
    bp8 = _round_up(batch, 8)
    tb = min(block_b, bp8)
    if bp8 > 8 and bp8 <= tb:
        tb = _round_up((bp8 + 1) // 2, 8)
    return tb


# ---------------------------------------------------------------------------
# Kernel: one (batch-tile, F-tile) grid step of the fused MLP.
# ---------------------------------------------------------------------------
def ffn_kernel(x_ref, w1_ref, b1_ref, w2_ref, b2_ref, o_ref, acc_ref):
    """
    x_ref : (TB, Hp)  bf16   input batch tile
    w1_ref: (Hp, tF)  bf16   layer-1 weight chunk (pre-transposed)
    b1_ref: (1,  tF)  f32    layer-1 bias chunk
    w2_ref: (tF, Hp)  bf16   layer-2 weight chunk (pre-transposed)
    b2_ref: (1,  Hp)  f32    layer-2 bias (full)
    o_ref : (TB, Hp)  f32    output batch tile (written once, at last F step)
    acc_ref: (TB, Hp) f32    VMEM accumulator across the F axis
    """
    f = pl.program_id(1)

    @pl.when(f == 0)
    def _init():
        acc_ref[...] = jnp.zeros_like(acc_ref)

    # Layer 1 chunk: (TB, Hp) @ (Hp, tF) on the MXU, f32 accumulation.
    h = jnp.dot(x_ref[...], w1_ref[...], preferred_element_type=jnp.float32)
    h = jnp.maximum(h + b1_ref[...], 0.0)            # bias + ReLU on the VPU (f32)

    # Layer 2 partial: (TB, tF) @ (tF, Hp), accumulate in f32 VMEM scratch.
    acc_ref[...] += jnp.dot(h.astype(w2_ref.dtype), w2_ref[...],
                            preferred_element_type=jnp.float32)

    @pl.when(f == pl.num_programs(1) - 1)
    def _finalize():
        # b2 added exactly once, here.
        o_ref[...] = (acc_ref[...] + b2_ref[...]).astype(o_ref.dtype)


# ---------------------------------------------------------------------------
# One-time parameter preparation (hoisted out of the per-call hot path).
# ---------------------------------------------------------------------------
def prepare_ffn_params(w1, b1, w2, b2, *, tf_target=512):
    """
    w1: (3H, H), b1: (3H,), w2: (H, 3H), b2: (H,)  -- PyTorch nn.Linear layout.
    Returns padded, pre-transposed, bf16 weights + f32 biases + tiling metadata.
    """
    w1 = jnp.asarray(w1, jnp.float32)
    b1 = jnp.asarray(b1, jnp.float32)
    w2 = jnp.asarray(w2, jnp.float32)
    b2 = jnp.asarray(b2, jnp.float32)

    F, H = w1.shape                       # F = 3H
    Hp = _round_up(H, 128)
    Fp = _round_up(F, 128)
    if Fp > tf_target:
        tF = tf_target                    # multiple of 256: fills v6e/v7x MXU cols
        Fp = _round_up(Fp, tF)
    else:
        tF = Fp                           # single F step for small hidden sizes

    w1_t = jnp.zeros((Hp, Fp), jnp.bfloat16).at[:H, :F].set(
        w1.T.astype(jnp.bfloat16))
    b1_p = jnp.zeros((1, Fp), jnp.float32).at[0, :F].set(b1)
    w2_t = jnp.zeros((Fp, Hp), jnp.bfloat16).at[:F, :H].set(
        w2.T.astype(jnp.bfloat16))
    b2_p = jnp.zeros((1, Hp), jnp.float32).at[0, :H].set(b2)

    return dict(w1_t=w1_t, b1_p=b1_p, w2_t=w2_t, b2_p=b2_p,
                H=H, F=F, Hp=Hp, Fp=Fp, tF=tF)


# ---------------------------------------------------------------------------
# Forward pass.
# ---------------------------------------------------------------------------
def ffn_forward(x, params, *, block_b=512):
    x = jnp.asarray(x)
    B, H = x.shape
    assert H == params["H"]
    Hp, Fp, tF, F = params["Hp"], params["Fp"], params["tF"], params["F"]

    TB = _choose_batch_tile(B, block_b)
    Bp = _round_up(B, TB)

    # Skip the pad/copy of x entirely when it is already tile-aligned.
    if B == Bp and H == Hp and x.dtype == jnp.bfloat16:
        x_p = x
    else:
        x_p = jnp.zeros((Bp, Hp), jnp.bfloat16).at[:B, :H].set(
            x.astype(jnp.bfloat16))

    grid = (Bp // TB, Fp // tF)

    # VMEM budget: double-buffered tiles + f32 accumulator + headroom.
    vmem_bytes = (
        2 * TB * Hp * 2          # x tile (bf16), double-buffered
        + 2 * Hp * tF * 2        # W1 tile (bf16) x2
        + 2 * tF * 2 * 4         # b1 chunk (f32) x2 (padded rows)
        + 2 * tF * Hp * 2        # W2 tile (bf16) x2
        + 2 * Hp * 2 * 4         # b2 (f32) x2 (padded rows)
        + 2 * TB * Hp * 4        # output tile (f32) x2
        + TB * Hp * 4            # accumulator scratch (f32)
        + TB * tF * 4            # live hidden chunk (f32)
    )
    vmem_limit = int(min(max(2 * vmem_bytes, 4 << 20), 64 << 20))

    cost = pl.CostEstimate(
        flops=2 * B * H * F + 2 * B * F * H,
        transcendentals=0,
        bytes_accessed=(x_p.size * 2 + params["w1_t"].size * 2
                        + params["w2_t"].size * 2
                        + params["b1_p"].size * 4 + params["b2_p"].size * 4
                        + Bp * Hp * 4),
    )

    out_p = pl.pallas_call(
        ffn_kernel,
        out_shape=jax.ShapeDtypeStruct((Bp, Hp), jnp.float32),
        grid_spec=pltpu.PrefetchScalarGridSpec(
            num_scalar_prefetch=0,
            grid=grid,
            in_specs=[
                pl.BlockSpec((TB, Hp), lambda b, f: (b, 0)),   # x batch tile
                pl.BlockSpec((Hp, tF), lambda b, f: (0, f)),   # W1^T F-chunk
                pl.BlockSpec((1, tF), lambda b, f: (0, f)),    # b1 F-chunk
                pl.BlockSpec((tF, Hp), lambda b, f: (f, 0)),   # W2^T F-chunk
                pl.BlockSpec((1, Hp), lambda b, f: (0, 0)),    # b2 (constant)
            ],
            out_specs=pl.BlockSpec((TB, Hp), lambda b, f: (b, 0)),
            scratch_shapes=[pltpu.VMEM((TB, Hp), jnp.float32)],
        ),
        compiler_params=pltpu.CompilerParams(
            # Batch tiles independent -> "parallel" (shardable across v7x TCs);
            # the F axis carries the accumulator -> "arbitrary".
            dimension_semantics=("parallel", "arbitrary"),
            vmem_limit_bytes=vmem_limit,
        ),
        cost_estimate=cost,
    )(x_p, params["w1_t"], params["b1_p"], params["w2_t"], params["b2_p"])

    return out_p[:B, :H]


# ---------------------------------------------------------------------------
# References.
# ---------------------------------------------------------------------------
def ffn_reference_f32(x, w1, b1, w2, b2):
    h = jnp.maximum(x @ w1.T + b1, 0.0)
    return h @ w2.T + b2


def ffn_reference_bf16(x, w1, b1, w2, b2):
    """Mirrors the kernel's bf16-input / f32-accumulate numerics."""
    xb = x.astype(jnp.bfloat16)
    w1b = w1.astype(jnp.bfloat16).T
    w2b = w2.astype(jnp.bfloat16).T
    h = jnp.dot(xb, w1b, preferred_element_type=jnp.float32) + b1
    h = jnp.maximum(h, 0.0)
    y = jnp.dot(h.astype(jnp.bfloat16), w2b,
                preferred_element_type=jnp.float32) + b2
    return y


if __name__ == "__main__":
    # Small demo shapes; the wrapper pads to (8, 128)-aligned tiles internally.
    B, H = 2, 32                       # batch, hidden_size  (3H = 96)

    key = jax.random.PRNGKey(0)
    kx, kw1, kb1, kw2, kb2 = jax.random.split(key, 5)

    # PyTorch-style uniform(-1/sqrt(fan_in), 1/sqrt(fan_in)) init.
    bound1 = 1.0 / jnp.sqrt(jnp.float32(H))
    bound2 = 1.0 / jnp.sqrt(jnp.float32(3 * H))
    x = jax.random.normal(kx, (B, H), dtype=jnp.float32)
    w1 = jax.random.uniform(kw1, (3 * H, H), minval=-bound1, maxval=bound1,
                            dtype=jnp.float32)
    b1 = jax.random.uniform(kb1, (3 * H,), minval=-bound1, maxval=bound1,
                            dtype=jnp.float32)
    w2 = jax.random.uniform(kw2, (H, 3 * H), minval=-bound2, maxval=bound2,
                            dtype=jnp.float32)
    b2 = jax.random.uniform(kb2, (H,), minval=-bound2, maxval=bound2,
                            dtype=jnp.float32)

    # One-time parameter prep (transpose + pad + bf16 cast), out of hot path.
    params = prepare_ffn_params(w1, b1, w2, b2)

    out = ffn_forward(x, params)
    jax.block_until_ready(out)
    assert out.shape == (B, H)

    # Loose check against the f32 reference (bf16 MXU inputs -> ~1e-2 rel err).
    ref_f32 = ffn_reference_f32(x, w1, b1, w2, b2)
    assert jnp.allclose(out, ref_f32, atol=3e-2, rtol=3e-2), (
        jnp.max(jnp.abs(out - ref_f32)))

    # Tighter check against a reference with matching bf16/f32 numerics.
    ref_bf16 = ffn_reference_bf16(x, w1, b1, w2, b2)
    assert jnp.allclose(out, ref_bf16, atol=2e-3, rtol=2e-3), (
        jnp.max(jnp.abs(out - ref_bf16)))

    print("KERNEL_OK")
</pallas_src>

<mosaic_0001>
module attributes {stable_mosaic.version = 11 : i64} {
  func.func @ffn_kernel(%arg0: i32, %arg1: i32, %arg2: memref<8x128xbf16, #tpu.memory_space<vmem>>, %arg3: memref<128x128xbf16, #tpu.memory_space<vmem>>, %arg4: memref<1x128xf32, #tpu.memory_space<vmem>>, %arg5: memref<128x128xbf16, #tpu.memory_space<vmem>>, %arg6: memref<1x128xf32, #tpu.memory_space<vmem>>, %arg7: memref<8x128xf32, #tpu.memory_space<vmem>>, %arg8: memref<8x128xf32, #tpu.memory_space<vmem>>) attributes {dimension_semantics = [#tpu.dimension_semantics<parallel>, #tpu.dimension_semantics<arbitrary>], iteration_bounds = array<i64: 1, 1>, scalar_prefetch = 0 : i64, scratch_operands = 1 : i64, tpu.core_type = #tpu.core_type<tc>, window_params = [{transform_indices = @transform_0, window_bounds = array<i64: 8, 128>}, {transform_indices = @transform_1, window_bounds = array<i64: 128, 128>}, {transform_indices = @transform_2, window_bounds = array<i64: 1, 128>}, {transform_indices = @transform_3, window_bounds = array<i64: 128, 128>}, {pipeline_mode = #tpu.pipeline_mode<synchronous>, transform_indices = @transform_4, window_bounds = array<i64: 1, 128>}, {transform_indices = @transform_5, window_bounds = array<i64: 8, 128>}]} {
    %c0_i32 = arith.constant 0 : i32
    %0 = arith.cmpi eq, %arg1, %c0_i32 : i32
    %1 = arith.extui %0 : i1 to i32
    %c0_i32_0 = arith.constant 0 : i32
    %2 = arith.cmpi ne, %1, %c0_i32_0 : i32
    scf.if %2 {
      %cst_16 = arith.constant 0.000000e+00 : f32
      %20 = vector.broadcast %cst_16 : f32 to vector<8x128xf32>
      %c0_17 = arith.constant 0 : index
      %c0_18 = arith.constant 0 : index
      %21 = vector.load %arg8[%c0_17, %c0_18] : memref<8x128xf32, #tpu.memory_space<vmem>>, vector<8x128xf32>
      tpu.vector_store %arg8[%c0_17, %c0_18], %20 {strides = array<i32>} : memref<8x128xf32, #tpu.memory_space<vmem>>, vector<8x128xf32>,
    } else {
    }
    %c0 = arith.constant 0 : index
    %c0_1 = arith.constant 0 : index
    %3 = vector.load %arg2[%c0, %c0_1] : memref<8x128xbf16, #tpu.memory_space<vmem>>, vector<8x128xbf16>
    %c0_2 = arith.constant 0 : index
    %c0_3 = arith.constant 0 : index
    %4 = vector.load %arg3[%c0_2, %c0_3] : memref<128x128xbf16, #tpu.memory_space<vmem>>, vector<128x128xbf16>
    %cst = arith.constant dense<0.000000e+00> : vector<8x128xf32>
    %5 = tpu.matmul %3, %4, %cst {dimension_numbers = #tpu.dot_dimension_numbers<[1], [0], [0], [1], [0, 0, 1, 1], [], []>} : vector<8x128xbf16>, vector<128x128xbf16>, vector<8x128xf32> -> vector<8x128xf32>
    %c0_4 = arith.constant 0 : index
    %c0_5 = arith.constant 0 : index
    %6 = vector.load %arg4[%c0_4, %c0_5] : memref<1x128xf32, #tpu.memory_space<vmem>>, vector<1x128xf32>
    %7 = vector.broadcast %6 : vector<1x128xf32> to vector<8x128xf32>
    %8 = arith.addf %5, %7 : vector<8x128xf32>
    %cst_6 = arith.constant 0.000000e+00 : f32
    %9 = vector.broadcast %cst_6 : f32 to vector<8x128xf32>
    %10 = arith.maximumf %8, %9 : vector<8x128xf32>
    %c0_7 = arith.constant 0 : index
    %c0_8 = arith.constant 0 : index
    %11 = vector.load %arg8[%c0_7, %c0_8] : memref<8x128xf32, #tpu.memory_space<vmem>>, vector<8x128xf32>
    %12 = arith.truncf %10 : vector<8x128xf32> to vector<8x128xbf16>
    %c0_9 = arith.constant 0 : index
    %c0_10 = arith.constant 0 : index
    %13 = vector.load %arg5[%c0_9, %c0_10] : memref<128x128xbf16, #tpu.memory_space<vmem>>, vector<128x128xbf16>
    %cst_11 = arith.constant dense<0.000000e+00> : vector<8x128xf32>
    %14 = tpu.matmul %12, %13, %cst_11 {dimension_numbers = #tpu.dot_dimension_numbers<[1], [0], [0], [1], [0, 0, 1, 1], [], []>} : vector<8x128xbf16>, vector<128x128xbf16>, vector<8x128xf32> -> vector<8x128xf32>
    %15 = arith.addf %11, %14 : vector<8x128xf32>
    %c0_12 = arith.constant 0 : index
    %c0_13 = arith.constant 0 : index
    %16 = vector.load %arg8[%c0_12, %c0_13] : memref<8x128xf32, #tpu.memory_space<vmem>>, vector<8x128xf32>
    tpu.vector_store %arg8[%c0_12, %c0_13], %15 {strides = array<i32>} : memref<8x128xf32, #tpu.memory_space<vmem>>, vector<8x128xf32>,
    %c0_i32_14 = arith.constant 0 : i32
    %17 = arith.cmpi eq, %arg1, %c0_i32_14 : i32
    %18 = arith.extui %17 : i1 to i32
    %c0_i32_15 = arith.constant 0 : i32
    %19 = arith.cmpi ne, %18, %c0_i32_15 : i32
    scf.if %19 {
      %c0_16 = arith.constant 0 : index
      %c0_17 = arith.constant 0 : index
      %20 = vector.load %arg8[%c0_16, %c0_17] : memref<8x128xf32, #tpu.memory_space<vmem>>, vector<8x128xf32>
      %c0_18 = arith.constant 0 : index
      %c0_19 = arith.constant 0 : index
      %21 = vector.load %arg6[%c0_18, %c0_19] : memref<1x128xf32, #tpu.memory_space<vmem>>, vector<1x128xf32>
      %22 = vector.broadcast %21 : vector<1x128xf32> to vector<8x128xf32>
      %23 = arith.addf %20, %22 : vector<8x128xf32>
      %c0_20 = arith.constant 0 : index
      %c0_21 = arith.constant 0 : index
      %24 = vector.load %arg7[%c0_20, %c0_21] : memref<8x128xf32, #tpu.memory_space<vmem>>, vector<8x128xf32>
      tpu.vector_store %arg7[%c0_20, %c0_21], %23 {strides = array<i32>} : memref<8x128xf32, #tpu.memory_space<vmem>>, vector<8x128xf32>,
    } else {
    }
    return
  }
  func.func @transform_0(%arg0: i32, %arg1: i32) -> (i32, i32) {
    %c0_i32 = arith.constant 0 : i32
    %c0_i32_0 = arith.constant 0 : i32
    return %arg0, %c0_i32 : i32, i32
  }
  func.func @transform_1(%arg0: i32, %arg1: i32) -> (i32, i32) {
    %c0_i32 = arith.constant 0 : i32
    %c0_i32_0 = arith.constant 0 : i32
    return %c0_i32, %arg1 : i32, i32
  }
  func.func @transform_2(%arg0: i32, %arg1: i32) -> (i32, i32) {
    %c0_i32 = arith.constant 0 : i32
    %c0_i32_0 = arith.constant 0 : i32
    return %c0_i32, %arg1 : i32, i32
  }
  func.func @transform_3(%arg0: i32, %arg1: i32) -> (i32, i32) {
    %c0_i32 = arith.constant 0 : i32
    %c0_i32_0 = arith.constant 0 : i32
    return %arg1, %c0_i32 : i32, i32
  }
  func.func @transform_4(%arg0: i32, %arg1: i32) -> (i32, i32) {
    %c0_i32 = arith.constant 0 : i32
    %c0_i32_0 = arith.constant 0 : i32
    %c0_i32_1 = arith.constant 0 : i32
    return %c0_i32, %c0_i32_0 : i32, i32
  }
  func.func @transform_5(%arg0: i32, %arg1: i32) -> (i32, i32) {
    %c0_i32 = arith.constant 0 : i32
    %c0_i32_0 = arith.constant 0 : i32
    return %arg0, %c0_i32 : i32, i32
  }
}

</mosaic_0001>

<bundles_post_ra>
// kernel: tpu_custom_call.1
= control target key start
LH: loop header
LB: loop body
LE: loop exit
PB: predicated region body
PF: predicated region fallthrough
CT: control target
= control target key end

     0   :  { %10 = vsyncpa [#allocation4], 0  ;;  %s558_s0 = inlined_call_operand.hbm [shape: bf16[8,128], index: 0, kind: input, shape index: {}]   ;;  %s559_s1 = inlined_call_operand.hbm [shape: bf16[128,128], index: 1, kind: input, shape index: {}]   ;;  %s560_s2 = inlined_call_operand.vmem [shape: f32[1,128], index: 2, kind: input, shape index: {}]   ;;  %s561_s3 = inlined_call_operand.hbm [shape: bf16[128,128], index: 3, kind: input, shape index: {}]   ;;  %s562_s4 = inlined_call_operand.vmem [shape: f32[1,128], index: 4, kind: input, shape index: {}]   ;;  %s563_s5 = inlined_call_operand.hbm [shape: f32[8,128], index: 5, kind: output, shape index: {}]  }
   0x1   :  { %11 = vsyncpa [#allocation7], 0 }
   0x2   :  { %12 = vsyncpa [#allocation5], 0  ;;  %s502_s18 = smov [#allocation6]  }
   0x3   :  { %s28_s19 = sshll.u32 %s502_s18, 4  ;;  %s29_s19 = int_to_ptr.vmem [resolvable:$true] %s28_s19 }
   0x4   :  { %s424_s20 = scalar_lea.vmem %s29_s19, 1024  ;;  %p429_p1 = scmp.lt.s32.totalorder %s29_s19, %s29_s19 }
   0x5   :  { %p425_p0 = scmp.ne.s32.totalorder %s29_s19, %s424_s20  ;;  %p430_p2 = scmp.lt.s32.totalorder %s424_s20, %s424_s20 }
   0x7   :  { %p431_p3 = por %p430_p2, %p429_p1 }
   0x9   :  { %p432_p4 = pnand %p431_p3, %p425_p0 }
   0xb   :  { %435 = shalt.err (!%p432_p4)
}
   0xc   :  { %s503_s21 = smov 64   ;;  %s504_s22 = smov 4  }
   0xd   :  { %34 = dma.hbm_to_vmem [thread:$0]  %s559_s1, 1024, %s29_s19, [#allocation7], %s503_s21, %s503_s21, %s504_s22  }
   0xe   :  { %s505_s25 = smov [#allocation3]   ;;  %s506_s27 = smov [#allocation8]  }
   0xf   :  { %s19_s26 = sshll.u32 %s505_s25, 4  ;;  %s42_s28 = sshll.u32 %s506_s27, 4  ;;  %s20_s26 = int_to_ptr.vmem [resolvable:$true] %s19_s26  ;;  %s43_s28 = int_to_ptr.vmem [resolvable:$true] %s42_s28 }
  0x10   :  { %s444_s29 = scalar_lea.vmem %s20_s26, 64  ;;  %p449_p6 = scmp.lt.s32.totalorder %s20_s26, %s20_s26 }
  0x11   :  { %p445_p5 = scmp.ne.s32.totalorder %s20_s26, %s444_s29  ;;  %p450_p7 = scmp.lt.s32.totalorder %s444_s29, %s444_s29 }
  0x13   :  { %p451_p8 = por %p450_p7, %p449_p6 }
  0x15   :  { %p452_p9 = pnand %p451_p8, %p445_p5 }
  0x17   :  { %455 = shalt.err (!%p452_p9)
}
  0x18   :  { %22 = dma.hbm_to_vmem [thread:$0]  %s558_s0, 64, %s20_s26, [#allocation4]  }
  0x19   :  { %s464_s7 = scalar_lea.vmem %s43_s28, 1024  ;;  %p469_p11 = scmp.lt.s32.totalorder %s43_s28, %s43_s28 }
  0x1a   :  { %p465_p10 = scmp.ne.s32.totalorder %s43_s28, %s464_s7  ;;  %p470_p12 = scmp.lt.s32.totalorder %s464_s7, %s464_s7 }
  0x1c   :  { %p471_p13 = por %p470_p12, %p469_p11 }
  0x1e   :  { %p472_p0 = pnand %p471_p13, %p465_p10 }
  0x20   :  { %475 = shalt.err (!%p472_p0)
}
  0x21   :  { %48 = dma.hbm_to_vmem [thread:$0]  %s561_s3, 1024, %s43_s28, [#allocation7], %s503_s21, %s503_s21, %s504_s22  }
  0x22   :  { %496 = dma.done.wait [#allocation4], 64  }
  0x23   :  { %497 = vsyncadd [#allocation4], 4294967232 }
  0x24   :  { %498 = dma.done.wait [#allocation7], 2048  }
  0x25   :  { %499 = vsyncadd [#allocation7], 4294965248  ;;  %v507_v0 = vmov 0.0   ;;  %vm508_vm0 = vmmov 0   ;;  %v400_v1 = vld [vmem:[#allocation6 + $0x38] sm:$0xff]   ;;  %v401_v2 = vld [vmem:[#allocation6 + $0x30] sm:$0xff]  }
  0x26   :  { %352 = vmatprep.subr.bf16.mxu0 %v507_v0  ;;  %368 = vmatprep.mubr.msk.bf16.mxu0 %vm508_vm0, %v507_v0  ;;  %v402_v3 = vld [vmem:[#allocation6 + $0x28] sm:$0xff]   ;;  %v408_v4 = vld [vmem:[#allocation8 + $0x38] sm:$0xff]   ;;  %v403_v5 = vld [vmem:[#allocation6 + $0x20] sm:$0xff]   ;;  %s509_s11 = smov [#allocation9]  }
  0x27   :  { %372 = vmatprep.subr.bf16.mxu1 %v507_v0  ;;  %388 = vmatprep.mubr.msk.bf16.mxu1 %vm508_vm0, %v507_v0  ;;  %v409_v6 = vld [vmem:[#allocation8 + $0x30] sm:$0xff]   ;;  %v404_v7 = vld [vmem:[#allocation6 + $0x18] sm:$0xff]   ;;  %v410_v8 = vld [vmem:[#allocation8 + $0x28] sm:$0xff]   ;;  %s306_s12 = sshll.u32 %s509_s11, 4  ;;  %s307_s12 = int_to_ptr.vmem [resolvable:$true] %s306_s12 }
  0x28   :  { %353 = vmatpush3.bf16.msra.mxu0 %v400_v1  ;;  %373 = vmatpush3.bf16.msra.mxu1 %v408_v4  ;;  %v405_v9 = vld [vmem:[#allocation6 + $0x10] sm:$0xff]   ;;  %v411_v10 = vld [vmem:[#allocation8 + $0x20] sm:$0xff]   ;;  %v406_v11 = vld [vmem:[#allocation6 + $0x8] sm:$0xff]   ;;  %p481_p2 = scmp.lt.s32.totalorder %s307_s12, %s307_s12 }
  0x29   :  { %354 = vmatprep.subr.bf16.mxu0 %v507_v0  ;;  %374 = vmatprep.subr.bf16.mxu1 %v507_v0  ;;  %v412_v12 = vld [vmem:[#allocation8 + $0x18] sm:$0xff]   ;;  %v407_v13 = vld [vmem:[#allocation6] sm:$0xff]   ;;  %v413_v14 = vld [vmem:[#allocation8 + $0x10] sm:$0xff]  }
  0x2a   :  { %v66_v15 = vld [vmem:[#allocation3] sm:$0xf]  ;;  %v414_v16 = vld [vmem:[#allocation8 + $0x8] sm:$0xff]   ;;  %v415_v17 = vld [vmem:[#allocation8] sm:$0xff]  }
  0x2b   :  { %v316_v18 = vld [vmem:[%s560_s2] ss:$0 sm:$0xff]  ;;  %s476_s2 = scalar_lea.vmem %s307_s12, 128 }
  0x2c   :  { %355 = vmatpush3.bf16.msra.mxu0 %v401_v2  ;;  %375 = vmatpush3.bf16.msra.mxu1 %v409_v6  ;;  %v333_v26 = vld [vmem:[%s562_s4] ss:$0 sm:$0xff]  ;;  %p477_p1 = scmp.ne.s32.totalorder %s307_s12, %s476_s2  ;;  %p482_p3 = scmp.lt.s32.totalorder %s476_s2, %s476_s2 }
  0x2d   :  { %356 = vmatprep.subr.bf16.mxu0 %v507_v0  ;;  %376 = vmatprep.subr.bf16.mxu1 %v507_v0 }
  0x2e   :  { %p483_p4 = por %p482_p3, %p481_p2 }
  0x30   :  { %357 = vmatpush3.bf16.msra.mxu0 %v402_v3  ;;  %377 = vmatpush3.bf16.msra.mxu1 %v410_v8  ;;  %p484_p5 = pnand %p483_p4, %p477_p1 }
  0x31   :  { %358 = vmatprep.subr.bf16.mxu0 %v507_v0  ;;  %378 = vmatprep.subr.bf16.mxu1 %v507_v0 }
  0x34   :  { %359 = vmatpush3.bf16.msra.mxu0 %v403_v5  ;;  %379 = vmatpush3.bf16.msra.mxu1 %v411_v10 }
  0x35   :  { %360 = vmatprep.subr.bf16.mxu0 %v507_v0  ;;  %380 = vmatprep.subr.bf16.mxu1 %v507_v0 }
  0x38   :  { %361 = vmatpush3.bf16.msra.mxu0 %v404_v7  ;;  %381 = vmatpush3.bf16.msra.mxu1 %v412_v12 }
  0x39   :  { %362 = vmatprep.subr.bf16.mxu0 %v507_v0  ;;  %382 = vmatprep.subr.bf16.mxu1 %v507_v0 }
  0x3c   :  { %363 = vmatpush3.bf16.msra.mxu0 %v405_v9  ;;  %383 = vmatpush3.bf16.msra.mxu1 %v413_v14 }
  0x3d   :  { %364 = vmatprep.subr.bf16.mxu0 %v507_v0  ;;  %384 = vmatprep.subr.bf16.mxu1 %v507_v0 }
  0x40   :  { %365 = vmatpush3.bf16.msra.mxu0 %v406_v11  ;;  %385 = vmatpush3.bf16.msra.mxu1 %v414_v16 }
  0x41   :  { %366 = vmatprep.subr.bf16.mxu0 %v507_v0  ;;  %386 = vmatprep.subr.bf16.mxu1 %v507_v0 }
  0x44   :  { %367 = vmatpush3.bf16.msra.mxu0 %v407_v13  ;;  %387 = vmatpush3.bf16.msra.mxu1 %v415_v17 }
  0x47   :  { %369 = vmatmul.mubr.bf16.vlgmr.msra.gmra.mxu0 %v66_v15 }
 0x107   :  { %v172_v19 = vpop.f32.mrf.mxu0 }
 0x108   :  { %v173_v20 = vadd.f32 %v316_v18, %v172_v19 }
 0x109   :  { %v370_v21 = vpop.f32.mrf.mxu0 }
 0x10a   :  { %v178_v22 = vmax.f32 %v173_v20, 0.0 }
 0x10b   :  { %v175_v23 = vpop.f32.mrf.mxu0 }
 0x10c   :  { %v180_v24 = vpack.c.bf16 %v178_v22, %v178_v22 }
 0x10d   :  { %v371_v25 = vpop.f32.mrf.mxu0 }
 0x10e   :  { %389 = vmatmul.mubr.bf16.vlgmr.msra.gmra.mxu1 %v180_v24 }
 0x1ce   :  { %v279_v27 = vpop.f32.mrf.mxu1 }
 0x1cf   :  { %v298_v28 = vadd.f32 %v333_v26, %v279_v27 }
 0x1d0   :  { %v390_v29 = vpop.f32.mrf.mxu1 }
 0x1d1   :  { %299 = vst [vmem:[#allocation9] sm:$0xff] %v298_v28 }
 0x1d2   :  { %v282_v30 = vpop.f32.mrf.mxu1 }
 0x1d3   :  { %487 = shalt.err (!%p484_p5)
}
 0x1d4   :  { %309 = dma.vmem_to_hbm [thread:$0]  %s307_s12, 128, %s563_s5, [#allocation5]   ;;  %v391_v31 = vpop.f32.mrf.mxu1 }
 0x1d5   :  { %500 = dma.done.wait [#allocation5], 128  }
 0x1d6   :  { %501 = vsyncadd [#allocation5], 4294967168 }
 0x1d7   :  { %313 = vsyncpa [#allocation4], 1 }
 0x1d8   :  { %314 = vsyncpa [#allocation7], 1 }
 0x1d9   :  { %315 = vsyncpa [#allocation5], 1 }

</bundles_post_ra>
